<compile_context>
chip_gen: v7x
topology: tpu7x:2x2x1
jax: 0.10.0
libtpu: 0.0.40
codegen_flags: <defaults>
</compile_context>

<pallas_src>
import functools
import math

import jax
import jax.numpy as jnp
from jax import lax
from jax.experimental import pallas as pl
from jax.experimental.pallas import tpu as pltpu


# dot_general dimension numbers for  x @ w.T  without materializing w.T
# (contract the last dim of both operands, no batch dims).
_CONTRACT_LAST = (((1,), (1,)), ((), ()))


def _mha_reaches_kernel(q_ref, k_ref, v_ref, r_ref,
                        wq_ref, wk_ref, wv_ref, wo_ref,
                        o_ref, concat_ref, *, heads, d_k, matmul_dtype):
    """One batch element per grid step; heads handled by a static loop."""
    S = q_ref.shape[1]
    D = q_ref.shape[2]
    md = matmul_dtype

    q = q_ref[0].astype(md)        # (S, D)
    k = k_ref[0].astype(md)        # (S, D)
    v = v_ref[0].astype(md)        # (S, D)
    r = r_ref[0]                   # (1, S) f32  ("reaches")

    inv_sqrt_dk = 1.0 / math.sqrt(d_k)

    # Full-width projections: x @ W.T with W in torch (out, in) layout.
    # One big MXU contraction over D per projection (good K/N shapes).
    qp = lax.dot_general(q, wq_ref[...].astype(md), _CONTRACT_LAST,
                         preferred_element_type=jnp.float32)     # (S, D)
    kp = lax.dot_general(k, wk_ref[...].astype(md), _CONTRACT_LAST,
                         preferred_element_type=jnp.float32)     # (S, D)
    vp = lax.dot_general(v, wv_ref[...].astype(md), _CONTRACT_LAST,
                         preferred_element_type=jnp.float32)     # (S, D)

    # Loop-invariant elementwise pieces, hoisted out of the head loop.
    rows = lax.broadcasted_iota(jnp.int32, (S, S), 0)
    cols = lax.broadcasted_iota(jnp.int32, (S, S), 1)
    eye = (rows == cols).astype(jnp.float32)                     # (S, S)
    #   scores*r - scores*r*0.999999*eye  ==  scores * (r * (1 - 0.999999*eye))
    reach_mask = r * (1.0 - 0.999999 * eye)                      # (S, S)

    rsum = jnp.sum(r)                                            # scalar
    contrib = (rsum - r) / (rsum + 1e-9) * (1.0 - r) * 100.0     # (1, S)
    contrib_col = contrib.reshape(S, 1)                          # per-query row

    # Per-head attention.  `heads` is a small compile-time constant, so a
    # static loop gives static lane offsets for the column slices / stores.
    # TODO(synk): for very long sequences, move `heads` onto the grid (axis
    # marked "arbitrary") so only one (S, S) score matrix is live per step.
    for h in range(heads):
        lo = h * d_k
        qh = qp[:, lo:lo + d_k]                                  # (S, d_k)
        kh = kp[:, lo:lo + d_k]
        vh = vp[:, lo:lo + d_k]

        # scores = softmax(q k^T / sqrt(d_k))   (stable, f32)
        s = lax.dot_general(qh.astype(md), kh.astype(md), _CONTRACT_LAST,
                            preferred_element_type=jnp.float32) * inv_sqrt_dk
        s = s - jnp.max(s, axis=-1, keepdims=True)
        p = jnp.exp(s)
        p = p * pl.reciprocal(jnp.sum(p, axis=-1, keepdims=True), approx=True)
        p = p * reach_mask                                       # reach + diag

        # output = v - scores @ v, then per-query-row contrib scaling.
        oh = vh - jnp.dot(p.astype(md), vh.astype(md),
                          preferred_element_type=jnp.float32)    # (S, d_k)
        concat_ref[:, lo:lo + d_k] = oh * contrib_col

    # Output projection: one (S, D) x (D, D) matmul (contraction dim = D).
    o_ref[0] = lax.dot_general(
        concat_ref[...].astype(md), wo_ref[...].astype(md), _CONTRACT_LAST,
        preferred_element_type=jnp.float32).astype(o_ref.dtype)


def multi_head_attention(q, k, v, reaches, wq, wk, wv, wo, *, heads,
                         matmul_dtype=jnp.float32):
    """q, k, v: (bs, S, D); reaches ("mask"): (bs, S); weights: (D, D) in
    torch.nn.Linear layout (out_features, in_features).

    Set matmul_dtype=jnp.bfloat16 on v6e/v7x for higher MXU throughput;
    elementwise softmax / reach / contrib math always stays in f32.
    """
    bs, S, D = q.shape
    assert D % heads == 0
    d_k = D // heads

    r3 = reaches.reshape(bs, 1, S)

    kernel = functools.partial(_mha_reaches_kernel, heads=heads, d_k=d_k,
                               matmul_dtype=matmul_dtype)

    xspec = pl.BlockSpec((1, S, D), lambda b: (b, 0, 0))
    # Weight blocks have a constant index map -> fetched once, kept resident.
    # TODO(synk): at realistic d_model, add pipeline_mode=pl.Buffered(1) to
    # these constant-index weight specs to drop their double-buffer copy
    # (matters on v7x's 64 MiB VMEM).
    wspec = pl.BlockSpec((D, D), lambda b: (0, 0))

    return pl.pallas_call(
        kernel,
        out_shape=jax.ShapeDtypeStruct((bs, S, D), q.dtype),
        grid_spec=pltpu.PrefetchScalarGridSpec(
            num_scalar_prefetch=0,
            grid=(bs,),
            in_specs=[
                xspec, xspec, xspec,                           # q, k, v
                pl.BlockSpec((1, 1, S), lambda b: (b, 0, 0)),  # reaches
                wspec, wspec, wspec, wspec,                    # Wq, Wk, Wv, Wo
            ],
            out_specs=xspec,
            scratch_shapes=[pltpu.VMEM((S, D), jnp.float32)],  # per-head concat
        ),
        compiler_params=pltpu.CompilerParams(
            dimension_semantics=("parallel",)),
    )(q, k, v, r3, wq, wk, wv, wo)


def _reference(q, k, v, reaches, wq, wk, wv, wo, heads):
    """Pure-JAX transcription of the PyTorch forward (for validation)."""
    bs, S, D = q.shape
    dk = D // heads
    qp = (q @ wq.T).reshape(bs, S, heads, dk).transpose(0, 2, 1, 3)
    kp = (k @ wk.T).reshape(bs, S, heads, dk).transpose(0, 2, 1, 3)
    vp = (v @ wv.T).reshape(bs, S, heads, dk).transpose(0, 2, 1, 3)
    scores = qp @ jnp.swapaxes(kp, -1, -2) / math.sqrt(dk)
    scores = jax.nn.softmax(scores, axis=-1)
    scores = scores * reaches[:, None, None, :]
    scores = scores - scores * 0.999999 * jnp.eye(S, dtype=scores.dtype)
    out = vp - scores @ vp
    rsum = reaches.sum(-1, keepdims=True)
    contrib = (rsum - reaches) / (rsum + 1e-9) * (1.0 - reaches) * 100.0
    out = out * contrib[:, None, :, None]
    concat = out.transpose(0, 2, 1, 3).reshape(bs, S, D)
    return concat @ wo.T


if __name__ == "__main__":
    bs, S, d_model, heads = 2, 8, 32, 4

    key = jax.random.PRNGKey(0)
    kq, kk, kv, kr, k1, k2, k3, k4 = jax.random.split(key, 8)

    q = jax.random.normal(kq, (bs, S, d_model), dtype=jnp.float32)
    k = jax.random.normal(kk, (bs, S, d_model), dtype=jnp.float32)
    v = jax.random.normal(kv, (bs, S, d_model), dtype=jnp.float32)
    # "mask" argument of forward() = reaches: one positive scalar per position.
    reaches = jax.random.uniform(kr, (bs, S), dtype=jnp.float32,
                                 minval=0.05, maxval=1.0)

    # Deterministic parameter init (torch.nn.Linear-style uniform bound).
    bound = 1.0 / math.sqrt(d_model)
    def init_w(kk_):
        return jax.random.uniform(kk_, (d_model, d_model), dtype=jnp.float32,
                                  minval=-bound, maxval=bound)
    wq, wk_, wv, wo = init_w(k1), init_w(k2), init_w(k3), init_w(k4)
    # TODO(synk): nn.Dropout(p=0.0) is the identity; no dropout is applied.

    # f32 MXU path (reference-accurate on all chips).
    out = multi_head_attention(q, k, v, reaches, wq, wk_, wv, wo, heads=heads)
    out = jax.block_until_ready(out)

    ref = _reference(q, k, v, reaches, wq, wk_, wv, wo, heads)
    assert out.shape == (bs, S, d_model)
    max_ref = float(jnp.max(jnp.abs(ref)))
    max_err = float(jnp.max(jnp.abs(out - ref)))
    # Scale-aware tolerance: outputs are inflated ~100x by the `contrib`
    # factor, and the softmax uses the approximate EUP reciprocal.
    assert max_err <= 2e-3 * max_ref + 1e-3, (max_err, max_ref)

    # bf16 MXU-operand path (the v6e/v7x recommendation): smoke test only.
    out_bf16 = multi_head_attention(q, k, v, reaches, wq, wk_, wv, wo,
                                    heads=heads, matmul_dtype=jnp.bfloat16)
    out_bf16 = jax.block_until_ready(out_bf16)
    assert out_bf16.shape == (bs, S, d_model)
    assert bool(jnp.all(jnp.isfinite(out_bf16)))

    print("KERNEL_OK")
</pallas_src>

<mosaic_0001>
module attributes {stable_mosaic.version = 11 : i64} {
  func.func @_mha_reaches_kernel(%arg0: i32, %arg1: memref<1x8x32xf32, #tpu.memory_space<vmem>>, %arg2: memref<1x8x32xf32, #tpu.memory_space<vmem>>, %arg3: memref<1x8x32xf32, #tpu.memory_space<vmem>>, %arg4: memref<1x1x8xf32, #tpu.memory_space<vmem>>, %arg5: memref<32x32xf32, #tpu.memory_space<vmem>>, %arg6: memref<32x32xf32, #tpu.memory_space<vmem>>, %arg7: memref<32x32xf32, #tpu.memory_space<vmem>>, %arg8: memref<32x32xf32, #tpu.memory_space<vmem>>, %arg9: memref<1x8x32xf32, #tpu.memory_space<vmem>>, %arg10: memref<8x32xf32, #tpu.memory_space<vmem>>) attributes {dimension_semantics = [#tpu.dimension_semantics<parallel>], iteration_bounds = array<i64: 2>, scalar_prefetch = 0 : i64, scratch_operands = 1 : i64, tpu.core_type = #tpu.core_type<tc>, window_params = [{transform_indices = @transform_0, window_bounds = array<i64: 1, 8, 32>}, {transform_indices = @transform_1, window_bounds = array<i64: 1, 8, 32>}, {transform_indices = @transform_2, window_bounds = array<i64: 1, 8, 32>}, {transform_indices = @transform_3, window_bounds = array<i64: 1, 1, 8>}, {pipeline_mode = #tpu.pipeline_mode<synchronous>, transform_indices = @transform_4, window_bounds = array<i64: 32, 32>}, {pipeline_mode = #tpu.pipeline_mode<synchronous>, transform_indices = @transform_5, window_bounds = array<i64: 32, 32>}, {pipeline_mode = #tpu.pipeline_mode<synchronous>, transform_indices = @transform_6, window_bounds = array<i64: 32, 32>}, {pipeline_mode = #tpu.pipeline_mode<synchronous>, transform_indices = @transform_7, window_bounds = array<i64: 32, 32>}, {transform_indices = @transform_8, window_bounds = array<i64: 1, 8, 32>}]} {
    %c0 = arith.constant 0 : index
    %c0_0 = arith.constant 0 : index
    %c0_1 = arith.constant 0 : index
    %0 = vector.load %arg1[%c0, %c0_0, %c0_1] : memref<1x8x32xf32, #tpu.memory_space<vmem>>, vector<1x8x32xf32>
    %1 = vector.shape_cast %0 : vector<1x8x32xf32> to vector<8x32xf32>
    %c0_2 = arith.constant 0 : index
    %c0_3 = arith.constant 0 : index
    %c0_4 = arith.constant 0 : index
    %2 = vector.load %arg2[%c0_2, %c0_3, %c0_4] : memref<1x8x32xf32, #tpu.memory_space<vmem>>, vector<1x8x32xf32>
    %3 = vector.shape_cast %2 : vector<1x8x32xf32> to vector<8x32xf32>
    %c0_5 = arith.constant 0 : index
    %c0_6 = arith.constant 0 : index
    %c0_7 = arith.constant 0 : index
    %4 = vector.load %arg3[%c0_5, %c0_6, %c0_7] : memref<1x8x32xf32, #tpu.memory_space<vmem>>, vector<1x8x32xf32>
    %5 = vector.shape_cast %4 : vector<1x8x32xf32> to vector<8x32xf32>
    %c0_8 = arith.constant 0 : index
    %c0_9 = arith.constant 0 : index
    %c0_10 = arith.constant 0 : index
    %6 = vector.load %arg4[%c0_8, %c0_9, %c0_10] : memref<1x1x8xf32, #tpu.memory_space<vmem>>, vector<1x1x8xf32>
    %7 = vector.shape_cast %6 : vector<1x1x8xf32> to vector<1x8xf32>
    %c0_11 = arith.constant 0 : index
    %c0_12 = arith.constant 0 : index
    %8 = vector.load %arg5[%c0_11, %c0_12] : memref<32x32xf32, #tpu.memory_space<vmem>>, vector<32x32xf32>
    %cst = arith.constant dense<0.000000e+00> : vector<8x32xf32>
    %9 = tpu.matmul %1, %8, %cst {dimension_numbers = #tpu.dot_dimension_numbers<[1], [1], [0], [0], [0, 0, 1, 0], [], []>} : vector<8x32xf32>, vector<32x32xf32>, vector<8x32xf32> -> vector<8x32xf32>
    %c0_13 = arith.constant 0 : index
    %c0_14 = arith.constant 0 : index
    %10 = vector.load %arg6[%c0_13, %c0_14] : memref<32x32xf32, #tpu.memory_space<vmem>>, vector<32x32xf32>
    %cst_15 = arith.constant dense<0.000000e+00> : vector<8x32xf32>
    %11 = tpu.matmul %3, %10, %cst_15 {dimension_numbers = #tpu.dot_dimension_numbers<[1], [1], [0], [0], [0, 0, 1, 0], [], []>} : vector<8x32xf32>, vector<32x32xf32>, vector<8x32xf32> -> vector<8x32xf32>
    %c0_16 = arith.constant 0 : index
    %c0_17 = arith.constant 0 : index
    %12 = vector.load %arg7[%c0_16, %c0_17] : memref<32x32xf32, #tpu.memory_space<vmem>>, vector<32x32xf32>
    %cst_18 = arith.constant dense<0.000000e+00> : vector<8x32xf32>
    %13 = tpu.matmul %5, %12, %cst_18 {dimension_numbers = #tpu.dot_dimension_numbers<[1], [1], [0], [0], [0, 0, 1, 0], [], []>} : vector<8x32xf32>, vector<32x32xf32>, vector<8x32xf32> -> vector<8x32xf32>
    %14 = tpu.iota {dimensions = array<i32: 0>} : vector<8x8xi32>
    %15 = tpu.iota {dimensions = array<i32: 1>} : vector<8x8xi32>
    %16 = arith.cmpi eq, %14, %15 : vector<8x8xi32>
    %17 = arith.extui %16 : vector<8x8xi1> to vector<8x8xi32>
    %18 = arith.sitofp %17 : vector<8x8xi32> to vector<8x8xf32>
    %cst_19 = arith.constant 0.999998986 : f32
    %19 = vector.broadcast %cst_19 : f32 to vector<8x8xf32>
    %20 = arith.mulf %19, %18 : vector<8x8xf32>
    %cst_20 = arith.constant 1.000000e+00 : f32
    %21 = vector.broadcast %cst_20 : f32 to vector<8x8xf32>
    %22 = arith.subf %21, %20 : vector<8x8xf32>
    %23 = vector.broadcast %7 : vector<1x8xf32> to vector<8x8xf32>
    %24 = arith.mulf %23, %22 : vector<8x8xf32>
    %25 = vector.shape_cast %7 : vector<1x8xf32> to vector<1x1x8xf32>
    %cst_21 = arith.constant dense<0.000000e+00> : vector<1xf32>
    %26 = vector.multi_reduction <add>, %25, %cst_21 [1, 2] : vector<1x1x8xf32> to vector<1xf32>
    %27 = vector.shape_cast %26 : vector<1xf32> to vector<1x1x1xf32>
    %28 = vector.extract %27[0, 0, 0] : f32 from vector<1x1x1xf32>
    %29 = vector.broadcast %28 : f32 to vector<1x8xf32>
    %30 = arith.subf %29, %7 : vector<1x8xf32>
    %cst_22 = arith.constant 9.99999971E-10 : f32
    %31 = arith.addf %28, %cst_22 : f32
    %32 = vector.broadcast %31 : f32 to vector<1x8xf32>
    %33 = arith.divf %30, %32 : vector<1x8xf32>
    %cst_23 = arith.constant 1.000000e+00 : f32
    %34 = vector.broadcast %cst_23 : f32 to vector<1x8xf32>
    %35 = arith.subf %34, %7 : vector<1x8xf32>
    %36 = arith.mulf %33, %35 : vector<1x8xf32>
    %cst_24 = arith.constant 1.000000e+02 : f32
    %37 = vector.broadcast %cst_24 : f32 to vector<1x8xf32>
    %38 = arith.mulf %36, %37 : vector<1x8xf32>
    %39 = vector.shape_cast %38 : vector<1x8xf32> to vector<8x1xf32>
    %40 = vector.extract_strided_slice %9 {offsets = [0, 0], sizes = [8, 8], strides = [1, 1]} : vector<8x32xf32> to vector<8x8xf32>
    %41 = vector.extract_strided_slice %11 {offsets = [0, 0], sizes = [8, 8], strides = [1, 1]} : vector<8x32xf32> to vector<8x8xf32>
    %42 = vector.extract_strided_slice %13 {offsets = [0, 0], sizes = [8, 8], strides = [1, 1]} : vector<8x32xf32> to vector<8x8xf32>
    %cst_25 = arith.constant dense<0.000000e+00> : vector<8x8xf32>
    %43 = tpu.matmul %40, %41, %cst_25 {dimension_numbers = #tpu.dot_dimension_numbers<[1], [1], [0], [0], [0, 0, 1, 0], [], []>} : vector<8x8xf32>, vector<8x8xf32>, vector<8x8xf32> -> vector<8x8xf32>
    %cst_26 = arith.constant 0.353553385 : f32
    %44 = vector.broadcast %cst_26 : f32 to vector<8x8xf32>
    %45 = arith.mulf %43, %44 : vector<8x8xf32>
    %cst_27 = arith.constant dense<0xFF800000> : vector<8xf32>
    %46 = vector.multi_reduction <maximumf>, %45, %cst_27 [1] : vector<8x8xf32> to vector<8xf32>
    %47 = vector.shape_cast %46 : vector<8xf32> to vector<8x1xf32>
    %48 = vector.broadcast %47 : vector<8x1xf32> to vector<8x8xf32>
    %49 = arith.subf %45, %48 : vector<8x8xf32>
    %50 = math.exp %49 : vector<8x8xf32>
    %cst_28 = arith.constant dense<0.000000e+00> : vector<8xf32>
    %51 = vector.multi_reduction <add>, %50, %cst_28 [1] : vector<8x8xf32> to vector<8xf32>
    %52 = vector.shape_cast %51 : vector<8xf32> to vector<8x1xf32>
    %53 = tpu.reciprocal %52 {approx = true} : vector<8x1xf32> -> vector<8x1xf32>
    %54 = vector.broadcast %53 : vector<8x1xf32> to vector<8x8xf32>
    %55 = arith.mulf %50, %54 : vector<8x8xf32>
    %56 = arith.mulf %55, %24 : vector<8x8xf32>
    %cst_29 = arith.constant dense<0.000000e+00> : vector<8x8xf32>
    %57 = tpu.matmul %56, %42, %cst_29 {dimension_numbers = #tpu.dot_dimension_numbers<[1], [0], [0], [1], [0, 0, 1, 1], [], []>} : vector<8x8xf32>, vector<8x8xf32>, vector<8x8xf32> -> vector<8x8xf32>
    %58 = arith.subf %42, %57 : vector<8x8xf32>
    %59 = vector.broadcast %39 : vector<8x1xf32> to vector<8x8xf32>
    %60 = arith.mulf %58, %59 : vector<8x8xf32>
    %c0_30 = arith.constant 0 : index
    %c0_31 = arith.constant 0 : index
    %61 = vector.load %arg10[%c0_30, %c0_31] : memref<8x32xf32, #tpu.memory_space<vmem>>, vector<8x8xf32>
    tpu.vector_store %arg10[%c0_30, %c0_31], %60 {strides = array<i32>} : memref<8x32xf32, #tpu.memory_space<vmem>>, vector<8x8xf32>,
    %62 = vector.extract_strided_slice %9 {offsets = [0, 8], sizes = [8, 8], strides = [1, 1]} : vector<8x32xf32> to vector<8x8xf32>
    %63 = vector.extract_strided_slice %11 {offsets = [0, 8], sizes = [8, 8], strides = [1, 1]} : vector<8x32xf32> to vector<8x8xf32>
    %64 = vector.extract_strided_slice %13 {offsets = [0, 8], sizes = [8, 8], strides = [1, 1]} : vector<8x32xf32> to vector<8x8xf32>
    %cst_32 = arith.constant dense<0.000000e+00> : vector<8x8xf32>
    %65 = tpu.matmul %62, %63, %cst_32 {dimension_numbers = #tpu.dot_dimension_numbers<[1], [1], [0], [0], [0, 0, 1, 0], [], []>} : vector<8x8xf32>, vector<8x8xf32>, vector<8x8xf32> -> vector<8x8xf32>
    %cst_33 = arith.constant 0.353553385 : f32
    %66 = vector.broadcast %cst_33 : f32 to vector<8x8xf32>
    %67 = arith.mulf %65, %66 : vector<8x8xf32>
    %cst_34 = arith.constant dense<0xFF800000> : vector<8xf32>
    %68 = vector.multi_reduction <maximumf>, %67, %cst_34 [1] : vector<8x8xf32> to vector<8xf32>
    %69 = vector.shape_cast %68 : vector<8xf32> to vector<8x1xf32>
    %70 = vector.broadcast %69 : vector<8x1xf32> to vector<8x8xf32>
    %71 = arith.subf %67, %70 : vector<8x8xf32>
    %72 = math.exp %71 : vector<8x8xf32>
    %cst_35 = arith.constant dense<0.000000e+00> : vector<8xf32>
    %73 = vector.multi_reduction <add>, %72, %cst_35 [1] : vector<8x8xf32> to vector<8xf32>
    %74 = vector.shape_cast %73 : vector<8xf32> to vector<8x1xf32>
    %75 = tpu.reciprocal %74 {approx = true} : vector<8x1xf32> -> vector<8x1xf32>
    %76 = vector.broadcast %75 : vector<8x1xf32> to vector<8x8xf32>
    %77 = arith.mulf %72, %76 : vector<8x8xf32>
    %78 = arith.mulf %77, %24 : vector<8x8xf32>
    %cst_36 = arith.constant dense<0.000000e+00> : vector<8x8xf32>
    %79 = tpu.matmul %78, %64, %cst_36 {dimension_numbers = #tpu.dot_dimension_numbers<[1], [0], [0], [1], [0, 0, 1, 1], [], []>} : vector<8x8xf32>, vector<8x8xf32>, vector<8x8xf32> -> vector<8x8xf32>
    %80 = arith.subf %64, %79 : vector<8x8xf32>
    %81 = vector.broadcast %39 : vector<8x1xf32> to vector<8x8xf32>
    %82 = arith.mulf %80, %81 : vector<8x8xf32>
    %c0_37 = arith.constant 0 : index
    %c8 = arith.constant 8 : index
    %83 = vector.load %arg10[%c0_37, %c8] : memref<8x32xf32, #tpu.memory_space<vmem>>, vector<8x8xf32>
    tpu.vector_store %arg10[%c0_37, %c8], %82 {strides = array<i32>} : memref<8x32xf32, #tpu.memory_space<vmem>>, vector<8x8xf32>,
    %84 = vector.extract_strided_slice %9 {offsets = [0, 16], sizes = [8, 8], strides = [1, 1]} : vector<8x32xf32> to vector<8x8xf32>
    %85 = vector.extract_strided_slice %11 {offsets = [0, 16], sizes = [8, 8], strides = [1, 1]} : vector<8x32xf32> to vector<8x8xf32>
    %86 = vector.extract_strided_slice %13 {offsets = [0, 16], sizes = [8, 8], strides = [1, 1]} : vector<8x32xf32> to vector<8x8xf32>
    %cst_38 = arith.constant dense<0.000000e+00> : vector<8x8xf32>
    %87 = tpu.matmul %84, %85, %cst_38 {dimension_numbers = #tpu.dot_dimension_numbers<[1], [1], [0], [0], [0, 0, 1, 0], [], []>} : vector<8x8xf32>, vector<8x8xf32>, vector<8x8xf32> -> vector<8x8xf32>
    %cst_39 = arith.constant 0.353553385 : f32
    %88 = vector.broadcast %cst_39 : f32 to vector<8x8xf32>
    %89 = arith.mulf %87, %88 : vector<8x8xf32>
    %cst_40 = arith.constant dense<0xFF800000> : vector<8xf32>
    %90 = vector.multi_reduction <maximumf>, %89, %cst_40 [1] : vector<8x8xf32> to vector<8xf32>
    %91 = vector.shape_cast %90 : vector<8xf32> to vector<8x1xf32>
    %92 = vector.broadcast %91 : vector<8x1xf32> to vector<8x8xf32>
    %93 = arith.subf %89, %92 : vector<8x8xf32>
    %94 = math.exp %93 : vector<8x8xf32>
    %cst_41 = arith.constant dense<0.000000e+00> : vector<8xf32>
    %95 = vector.multi_reduction <add>, %94, %cst_41 [1] : vector<8x8xf32> to vector<8xf32>
    %96 = vector.shape_cast %95 : vector<8xf32> to vector<8x1xf32>
    %97 = tpu.reciprocal %96 {approx = true} : vector<8x1xf32> -> vector<8x1xf32>
    %98 = vector.broadcast %97 : vector<8x1xf32> to vector<8x8xf32>
    %99 = arith.mulf %94, %98 : vector<8x8xf32>
    %100 = arith.mulf %99, %24 : vector<8x8xf32>
    %cst_42 = arith.constant dense<0.000000e+00> : vector<8x8xf32>
    %101 = tpu.matmul %100, %86, %cst_42 {dimension_numbers = #tpu.dot_dimension_numbers<[1], [0], [0], [1], [0, 0, 1, 1], [], []>} : vector<8x8xf32>, vector<8x8xf32>, vector<8x8xf32> -> vector<8x8xf32>
    %102 = arith.subf %86, %101 : vector<8x8xf32>
    %103 = vector.broadcast %39 : vector<8x1xf32> to vector<8x8xf32>
    %104 = arith.mulf %102, %103 : vector<8x8xf32>
    %c0_43 = arith.constant 0 : index
    %c16 = arith.constant 16 : index
    %105 = vector.load %arg10[%c0_43, %c16] : memref<8x32xf32, #tpu.memory_space<vmem>>, vector<8x8xf32>
    tpu.vector_store %arg10[%c0_43, %c16], %104 {strides = array<i32>} : memref<8x32xf32, #tpu.memory_space<vmem>>, vector<8x8xf32>,
    %106 = vector.extract_strided_slice %9 {offsets = [0, 24], sizes = [8, 8], strides = [1, 1]} : vector<8x32xf32> to vector<8x8xf32>
    %107 = vector.extract_strided_slice %11 {offsets = [0, 24], sizes = [8, 8], strides = [1, 1]} : vector<8x32xf32> to vector<8x8xf32>
    %108 = vector.extract_strided_slice %13 {offsets = [0, 24], sizes = [8, 8], strides = [1, 1]} : vector<8x32xf32> to vector<8x8xf32>
    %cst_44 = arith.constant dense<0.000000e+00> : vector<8x8xf32>
    %109 = tpu.matmul %106, %107, %cst_44 {dimension_numbers = #tpu.dot_dimension_numbers<[1], [1], [0], [0], [0, 0, 1, 0], [], []>} : vector<8x8xf32>, vector<8x8xf32>, vector<8x8xf32> -> vector<8x8xf32>
    %cst_45 = arith.constant 0.353553385 : f32
    %110 = vector.broadcast %cst_45 : f32 to vector<8x8xf32>
    %111 = arith.mulf %109, %110 : vector<8x8xf32>
    %cst_46 = arith.constant dense<0xFF800000> : vector<8xf32>
    %112 = vector.multi_reduction <maximumf>, %111, %cst_46 [1] : vector<8x8xf32> to vector<8xf32>
    %113 = vector.shape_cast %112 : vector<8xf32> to vector<8x1xf32>
    %114 = vector.broadcast %113 : vector<8x1xf32> to vector<8x8xf32>
    %115 = arith.subf %111, %114 : vector<8x8xf32>
    %116 = math.exp %115 : vector<8x8xf32>
    %cst_47 = arith.constant dense<0.000000e+00> : vector<8xf32>
    %117 = vector.multi_reduction <add>, %116, %cst_47 [1] : vector<8x8xf32> to vector<8xf32>
    %118 = vector.shape_cast %117 : vector<8xf32> to vector<8x1xf32>
    %119 = tpu.reciprocal %118 {approx = true} : vector<8x1xf32> -> vector<8x1xf32>
    %120 = vector.broadcast %119 : vector<8x1xf32> to vector<8x8xf32>
    %121 = arith.mulf %116, %120 : vector<8x8xf32>
    %122 = arith.mulf %121, %24 : vector<8x8xf32>
    %cst_48 = arith.constant dense<0.000000e+00> : vector<8x8xf32>
    %123 = tpu.matmul %122, %108, %cst_48 {dimension_numbers = #tpu.dot_dimension_numbers<[1], [0], [0], [1], [0, 0, 1, 1], [], []>} : vector<8x8xf32>, vector<8x8xf32>, vector<8x8xf32> -> vector<8x8xf32>
    %124 = arith.subf %108, %123 : vector<8x8xf32>
    %125 = vector.broadcast %39 : vector<8x1xf32> to vector<8x8xf32>
    %126 = arith.mulf %124, %125 : vector<8x8xf32>
    %c0_49 = arith.constant 0 : index
    %c24 = arith.constant 24 : index
    %127 = vector.load %arg10[%c0_49, %c24] : memref<8x32xf32, #tpu.memory_space<vmem>>, vector<8x8xf32>
    tpu.vector_store %arg10[%c0_49, %c24], %126 {strides = array<i32>} : memref<8x32xf32, #tpu.memory_space<vmem>>, vector<8x8xf32>,
    %c0_50 = arith.constant 0 : index
    %c0_51 = arith.constant 0 : index
    %128 = vector.load %arg10[%c0_50, %c0_51] : memref<8x32xf32, #tpu.memory_space<vmem>>, vector<8x32xf32>
    %c0_52 = arith.constant 0 : index
    %c0_53 = arith.constant 0 : index
    %129 = vector.load %arg8[%c0_52, %c0_53] : memref<32x32xf32, #tpu.memory_space<vmem>>, vector<32x32xf32>
    %cst_54 = arith.constant dense<0.000000e+00> : vector<8x32xf32>
    %130 = tpu.matmul %128, %129, %cst_54 {dimension_numbers = #tpu.dot_dimension_numbers<[1], [1], [0], [0], [0, 0, 1, 0], [], []>} : vector<8x32xf32>, vector<32x32xf32>, vector<8x32xf32> -> vector<8x32xf32>
    %c0_55 = arith.constant 0 : index
    %c0_56 = arith.constant 0 : index
    %c0_57 = arith.constant 0 : index
    %131 = vector.load %arg9[%c0_55, %c0_56, %c0_57] : memref<1x8x32xf32, #tpu.memory_space<vmem>>, vector<1x8x32xf32>
    %132 = vector.shape_cast %131 : vector<1x8x32xf32> to vector<8x32xf32>
    %133 = vector.shape_cast %130 : vector<8x32xf32> to vector<1x8x32xf32>
    tpu.vector_store %arg9[%c0_55, %c0_56, %c0_57], %133 {strides = array<i32>} : memref<1x8x32xf32, #tpu.memory_space<vmem>>, vector<1x8x32xf32>,
    return
  }
  func.func @transform_0(%arg0: i32) -> (i32, i32, i32) {
    %c0_i32 = arith.constant 0 : i32
    %c0_i32_0 = arith.constant 0 : i32
    %c0_i32_1 = arith.constant 0 : i32
    return %arg0, %c0_i32, %c0_i32_0 : i32, i32, i32
  }
  func.func @transform_1(%arg0: i32) -> (i32, i32, i32) {
    %c0_i32 = arith.constant 0 : i32
    %c0_i32_0 = arith.constant 0 : i32
    %c0_i32_1 = arith.constant 0 : i32
    return %arg0, %c0_i32, %c0_i32_0 : i32, i32, i32
  }
  func.func @transform_2(%arg0: i32) -> (i32, i32, i32) {
    %c0_i32 = arith.constant 0 : i32
    %c0_i32_0 = arith.constant 0 : i32
    %c0_i32_1 = arith.constant 0 : i32
    return %arg0, %c0_i32, %c0_i32_0 : i32, i32, i32
  }
  func.func @transform_3(%arg0: i32) -> (i32, i32, i32) {
    %c0_i32 = arith.constant 0 : i32
    %c0_i32_0 = arith.constant 0 : i32
    %c0_i32_1 = arith.constant 0 : i32
    return %arg0, %c0_i32, %c0_i32_0 : i32, i32, i32
  }
  func.func @transform_4(%arg0: i32) -> (i32, i32) {
    %c0_i32 = arith.constant 0 : i32
    %c0_i32_0 = arith.constant 0 : i32
    %c0_i32_1 = arith.constant 0 : i32
    return %c0_i32, %c0_i32_0 : i32, i32
  }
  func.func @transform_5(%arg0: i32) -> (i32, i32) {
    %c0_i32 = arith.constant 0 : i32
    %c0_i32_0 = arith.constant 0 : i32
    %c0_i32_1 = arith.constant 0 : i32
    return %c0_i32, %c0_i32_0 : i32, i32
  }
  func.func @transform_6(%arg0: i32) -> (i32, i32) {
    %c0_i32 = arith.constant 0 : i32
    %c0_i32_0 = arith.constant 0 : i32
    %c0_i32_1 = arith.constant 0 : i32
    return %c0_i32, %c0_i32_0 : i32, i32
  }
  func.func @transform_7(%arg0: i32) -> (i32, i32) {
    %c0_i32 = arith.constant 0 : i32
    %c0_i32_0 = arith.constant 0 : i32
    %c0_i32_1 = arith.constant 0 : i32
    return %c0_i32, %c0_i32_0 : i32, i32
  }
  func.func @transform_8(%arg0: i32) -> (i32, i32, i32) {
    %c0_i32 = arith.constant 0 : i32
    %c0_i32_0 = arith.constant 0 : i32
    %c0_i32_1 = arith.constant 0 : i32
    return %arg0, %c0_i32, %c0_i32_0 : i32, i32, i32
  }
}

</mosaic_0001>

<bundles_post_ra>
// kernel: tpu_custom_call.1
= control target key start
LH: loop header
LB: loop body
LE: loop exit
PB: predicated region body
PF: predicated region fallthrough
CT: control target
= control target key end

     0   :  { %s2933_s0 = inlined_call_operand.hbm [shape: f32[2,8,32], index: 0, kind: input, shape index: {}]   ;;  %s2934_s1 = inlined_call_operand.hbm [shape: f32[2,8,32], index: 1, kind: input, shape index: {}]   ;;  %s2935_s2 = inlined_call_operand.hbm [shape: f32[2,8,32], index: 2, kind: input, shape index: {}]   ;;  %s2936_s3 = inlined_call_operand.vmem [shape: f32[2,1,8], index: 3, kind: input, shape index: {}]   ;;  %s2937_s4 = inlined_call_operand.hbm [shape: f32[32,32], index: 4, kind: input, shape index: {}]   ;;  %s2938_s5 = inlined_call_operand.hbm [shape: f32[32,32], index: 5, kind: input, shape index: {}]   ;;  %s2939_s6 = inlined_call_operand.hbm [shape: f32[32,32], index: 6, kind: input, shape index: {}]   ;;  %s2940_s7 = inlined_call_operand.hbm [shape: f32[32,32], index: 7, kind: input, shape index: {}]   ;;  %s2941_s8 = inlined_call_operand.hbm [shape: f32[2,8,32], index: 8, kind: output, shape index: {}]  }
   0x1   :  { %2967 = sst [smem:[#allocation27_spill]] %s2934_s1 }
   0x2   :  { %2968 = sst [smem:[#allocation28_spill]] %s2937_s4 }
   0x3   :  { %2969 = sst [smem:[#allocation29_spill]] %s2939_s6 }
   0x4   :  { %2970 = sst [smem:[#allocation30_spill]] %s2941_s8 }
   0x5   :  { %13 = vsyncpa [#allocation4], 0 }
   0x6   :  { %15 = vsyncpa [#allocation4 + $0x1], 0 }
   0x7   :  { %16 = vsyncpa [#allocation7], 0 }
   0x8   :  { %18 = vsyncpa [#allocation7 + $0x1], 0 }
   0x9   :  { %19 = vsyncpa [#allocation10], 0 }
   0xa   :  { %20 = vsyncpa [#allocation13], 0 }
   0xb   :  { %21 = vsyncpa [#allocation5], 0 }
   0xc   :  { %23 = vsyncpa [#allocation5 + $0x1], 0  ;;  %s2421_s27 = smov 0   ;;  %s2423_s28 = smov 0  }
   0xd   :  { %s2425_s29 = smov 0   ;;  %s2427_s30 = smov 0  }
   0xe LB: > { %2971 = sst [smem:[#allocation21_spill]] %s2343_s27  ;;  %s2357_s9 = smov [#allocation9]   ;;  %s2355_s30 = sphi %s2427_s30, %s3012_s30   ;;  %s2351_s29 = sphi %s2425_s29, %s3016_s29   ;;  %s2347_s28 = sphi %s2423_s28, %s3015_s28   ;;  %s2343_s27 = sphi %s2421_s27, %s3014_s27  }
   0xf   : > { %2972 = sst [smem:[#allocation22_spill]] %s2355_s30  ;;  %s260_s10 = sshll.u32 %s2357_s9, 4  ;;  %s2447_s10 = int_to_ptr.vmem [resolvable:$true] %s260_s10 }
  0x10   : > { %s2442_s11 = sadd.s32 4294967295, %s2355_s30   ;;  %p1737_p0 = scmp.ge.s32.totalorder %s2355_s30, 1 }
  0x11   : > { %p2952_p1 = scmp.eq.s32.totalorder %s2442_s11, 0  ;;  %p248_p2 = scmp.lt.s32.totalorder %s2355_s30, 3 }
  0x12   : > { %s2358_s13 = smov [#allocation12]   ;;  %s2975_s4 = sld [smem:[#allocation28_spill]] }
  0x13   : > { %p2449_p3 = pnand %p1737_p0, %p248_p2  ;;  %s286_s14 = sshll.u32 %s2358_s13, 4  ;;  %s2462_s14 = int_to_ptr.vmem [resolvable:$true] %s286_s14 }
  0x15   : > { %s2973_s12 = scalar_select %p2449_p3, 1, 0 }
  0x16   : > { %p1973_p5 = pneg %p2449_p3 }
  0x18   : > { %p2458_p6 = pnand %p1973_p5, %p2952_p1  ;;  %s2075_s18 = scalar_lea.hbm %s2975_s4, 512 }
  0x19   : > { %p2076_p7 = scmp.ne.s32.totalorder %s2975_s4, %s2075_s18  ;;  %p2082_p11 = scmp.lt.u32.totalorder %s2075_s18, %s2975_s4 }
  0x1a   : > { %s2974_s15 = scalar_select %p2458_p6, 1, 0 }
  0x1b   : > { %p2472_p8 = pneg %p2458_p6 }
  0x1d   : > { %s2976_s21 = scalar_select %p2472_p8, 1, 0 }
  0x1e   : > { %p2078_p9 = pnand %p2472_p8, %p2076_p7 }
  0x20   : > { %p2079_p10 = pneg %p2078_p9 }
  0x22   : > { %p2084_p12 = pnand %p2082_p11, %p2079_p10 }
  0x24   : > { %2087 = shalt.err (!%p2084_p12)
}
  0x25   : > { %s2088_s24 = scalar_lea.vmem %s2447_s10, 512  ;;  %p2096_p5 = scmp.lt.s32.totalorder %s2447_s10, %s2447_s10 }
  0x26   : > { %p2089_p13 = scmp.ne.s32.totalorder %s2447_s10, %s2088_s24  ;;  %p2097_p4 = scmp.lt.s32.totalorder %s2088_s24, %s2088_s24 }
  0x28   : > { %p2091_p0 = pnand %p2089_p13, %p2472_p8  ;;  %p2098_p7 = por %p2097_p4, %p2096_p5 }
  0x2a   : > { %p2092_p2 = pneg %p2091_p0 }
  0x2c   : > { %p2099_p9 = pnand %p2098_p7, %p2092_p2 }
  0x2e   : > { %2102 = shalt.err (!%p2099_p9)
}
  0x2f   : > { %s2943_s25 = smov 128   ;;  %s2946_s26 = smov 8  }
  0x30   : > { %1976 = dma.hbm_to_vmem [thread:$0]  (!%p2458_p6), %s2975_s4, 512, %s2447_s10, [#allocation10], %s2943_s25, %s2943_s25, %s2946_s26  }
  0x31   : > { %s2977_s6 = sld [smem:[#allocation29_spill]] }
  0x37   : > { %s2103_s18 = scalar_lea.hbm %s2977_s6, 512 }
  0x38   : > { %p2104_p4 = scmp.ne.s32.totalorder %s2977_s6, %s2103_s18  ;;  %p2110_p12 = scmp.lt.u32.totalorder %s2103_s18, %s2977_s6 }
  0x3a   : > { %p2106_p10 = pnand %p2104_p4, %p2472_p8 }
  0x3c   : > { %p2107_p11 = pneg %p2106_p10 }
  0x3e   : > { %p2112_p13 = pnand %p2110_p12, %p2107_p11 }
  0x40   : > { %2115 = shalt.err (!%p2112_p13)
}
  0x41   : > { %s2116_s10 = scalar_lea.vmem %s2462_s14, 512  ;;  %p2124_p7 = scmp.lt.s32.totalorder %s2462_s14, %s2462_s14 }
  0x42   : > { %p2117_p0 = scmp.ne.s32.totalorder %s2462_s14, %s2116_s10  ;;  %p2125_p9 = scmp.lt.s32.totalorder %s2116_s10, %s2116_s10 }
  0x44   : > { %p2119_p2 = pnand %p2117_p0, %p2472_p8  ;;  %p2126_p4 = por %p2125_p9, %p2124_p7 }
  0x46   : > { %p2120_p5 = pneg %p2119_p2 }
  0x48   : > { %p2127_p10 = pnand %p2126_p4, %p2120_p5 }
  0x4a   : > { %2130 = shalt.err (!%p2127_p10)
}
  0x4b   : > { %1982 = dma.hbm_to_vmem [thread:$0]  (!%p2458_p6), %s2977_s6, 512, %s2462_s14, [#allocation13], %s2943_s25, %s2943_s25, %s2946_s26  }
  0x4c   : > { %s1736_s13 = sadd.s32 4294967294, %s2355_s30   ;;  %s2524_s16 = sadd.s32 1, %s2355_s30  }
  0x4d   : > { %2978 = sst [smem:[#allocation23_spill]] %s2524_s16  ;;  %s33_s17 = ssub.s32 %s2355_s30, %s2524_s16 }
  0x4e   : > { %s36_s18 = sadd.s32 1, %s2351_s29  ;;  %p34_p11 = scmp.eq.s32.totalorder %s33_s17, 0 }
  0x4f   : > { %p43_p12 = scmp.ne.s32.totalorder %s2351_s29, %s2347_s28  ;;  %p44_p13 = scmp.eq.s32.totalorder %s2355_s30, 0 }
  0x50   : > { %p49_p0 = scmp.ne.s32.totalorder %s2347_s28, %s2343_s27  ;;  %p235_p7 = scmp.eq.s32.totalorder %s2442_s11, 1 }
  0x51   : > { %s2535_s19 = scalar_select %p34_p11, %s2351_s29, %s36_s18  }
  0x52   : > { %p45_p2 = por %p44_p13, %p43_p12  ;;  %p2539_p5 = por %p2952_p1, %p49_p0 }
  0x53   : > { %2979 = sst [smem:[#allocation24_spill]] %s2535_s19  ;;  %p241_p9 = scmp.eq.s32.totalorder %s1736_s13, 1 }
  0x54   : > { %s2980_s20 = scalar_select %p2539_p5, 1, 0 }
  0x55   : > { %p2004_p4 = scmp.lt.s32.totalorder %s2355_s30, 2  ;;  %s2945_s14 = sand.u32 1, %s2351_s29  }
  0x56   : > { %p2546_p10 = por %p235_p7, %p43_p12  ;;  %p2550_p3 = por %p241_p9, %p49_p0 }
  0x57   : > { %s2556_s10 = sshll.u32 %s2945_s14, 3  ;;  %s2559_s24 = sshll.u32 %s2355_s30, 7 }
  0x58   : > { %s2981_s22 = scalar_select %p2546_p10, 1, 0 }
  0x59   : > { %s2983_s23 = scalar_select %p2550_p3, 1, 0 }
  0x5a   : > { %2982 = sst [smem:[#allocation25_spill]] %s2981_s22  ;;  %p2561_p11 = pnand %p2004_p4, %p45_p2 }
  0x5b   : > { %2984 = sst [smem:[#allocation26_spill]] %s2983_s23  ;;  %s331_s13 = sand.u32 1, %s2355_s30  }
  0x5c   : > { %s2985_s9 = scalar_select %p2561_p11, 1, 0 }
  0x5d   : > { %s2986_s1 = sld [smem:[#allocation27_spill]]  ;;  %s335_s14 = scalar_lea.vmem [#allocation6], %s2556_s10 }
  0x5e   : > { %s342_s26 = sshll.u32 %s335_s14, 4  ;;  %s2361_s4 = smov [#allocation11]   ;;  %s2573_s26 = int_to_ptr.vmem [resolvable:$true] %s342_s26 }
  0x5f   : > { %s2575_s6 = sshll.u32 %s2361_s4, 4  ;;  %s2577_s19 = scalar_lea.sflag [#allocation7], %s331_s13  ;;  %s274_s6 = int_to_ptr.vmem [resolvable:$true] %s2575_s6 }
  0x60   : > { %p2583_p13 = pneg %p2561_p11 }
  0x62   : > { %s2987_s17 = scalar_select %p2583_p13, 1, 0 }
  0x63   : > { %s2570_s25 = scalar_lea.hbm %s2986_s1, %s2559_s24  ;;  %s2136_s30 = scalar_lea.hbm %s2986_s1, 256 }
  0x64   : > { %s2131_s16 = scalar_lea.hbm %s2570_s25, 128  ;;  %p2137_p7 = scmp.lt.u32.totalorder %s2570_s25, %s2986_s1 }
  0x65   : > { %p2132_p12 = scmp.ne.s32.totalorder %s2570_s25, %s2131_s16  ;;  %p2138_p9 = scmp.lt.u32.totalorder %s2136_s30, %s2131_s16 }
  0x66   : > { %p2140_p1 = scmp.lt.u32.totalorder %s2131_s16, %s2570_s25 }
  0x67   : > { %p2134_p0 = pnand %p2583_p13, %p2132_p12  ;;  %p2139_p4 = por %p2138_p9, %p2137_p7 }
  0x69   : > { %p2135_p2 = pneg %p2134_p0  ;;  %p2141_p3 = por %p2140_p1, %p2139_p4 }
  0x6b   : > { %p2142_p10 = pnand %p2141_p3, %p2135_p2 }
  0x6d   : > { %2145 = shalt.err (!%p2142_p10)
}
  0x6e   : > { %s2146_s13 = scalar_lea.vmem %s2573_s26, 128  ;;  %s2362_s18 = smov [#allocation6]  }
  0x6f   : > { %p2147_p12 = scmp.ne.s32.totalorder %s2573_s26, %s2146_s13  ;;  %s2151_s14 = sshll.u32 %s2362_s18, 4  ;;  %s2152_s14 = int_to_ptr.vmem [resolvable:$false] %s2151_s14 }
  0x70   : > { %s2153_s23 = scalar_lea.vmem %s2152_s14, 256  ;;  %p2154_p6 = scmp.lt.s32.totalorder %s2573_s26, %s2152_s14 }
  0x71   : > { %p2149_p0 = pnand %p2147_p12, %p2583_p13  ;;  %p2155_p8 = scmp.lt.s32.totalorder %s2153_s23, %s2146_s13 }
  0x73   : > { %p2150_p5 = pneg %p2149_p0  ;;  %p2156_p7 = por %p2155_p8, %p2154_p6 }
  0x75   : > { %p2157_p9 = pnand %p2156_p7, %p2150_p5 }
  0x77   : > { %2160 = shalt.err (!%p2157_p9)
}
  0x78   : > { %1992 = dma.hbm_to_vmem [thread:$0]  (!%p2561_p11), %s2570_s25, 128, %s2573_s26, %s2577_s19  }
  0x79   : > { %s2161_s4 = scalar_lea.hbm %s2938_s5, 512  ;;  %p2988_p3 = scmp.ne.s32.totalorder %s2976_s21, 0 }
  0x7a   : > { %p2162_p1 = scmp.ne.s32.totalorder %s2938_s5, %s2161_s4  ;;  %p2168_p5 = scmp.lt.u32.totalorder %s2161_s4, %s2938_s5 }
  0x7c   : > { %p2164_p6 = pnand %p2162_p1, %p2988_p3 }
  0x7e   : > { %p2165_p8 = pneg %p2164_p6 }
  0x80   : > { %p2170_p10 = pnand %p2168_p5, %p2165_p8 }
  0x82   : > { %2173 = shalt.err (!%p2170_p10)
}
  0x83   : > { %s2174_s23 = scalar_lea.vmem %s274_s6, 512  ;;  %p2182_p0 = scmp.lt.s32.totalorder %s274_s6, %s274_s6 }
  0x84   : > { %p2175_p2 = scmp.ne.s32.totalorder %s274_s6, %s2174_s23  ;;  %p2183_p7 = scmp.lt.s32.totalorder %s2174_s23, %s2174_s23 }
  0x86   : > { %p2177_p4 = pnand %p2175_p2, %p2988_p3  ;;  %p2184_p9 = por %p2183_p7, %p2182_p0 }
  0x88   : > { %p2178_p12 = pneg %p2177_p4 }
  0x8a   : > { %p2185_p11 = pnand %p2184_p9, %p2178_p12 }
  0x8c   : > { %2188 = shalt.err (!%p2185_p11)
}
  0x8d   : > { %p2989_p1 = scmp.ne.s32.totalorder %s2974_s15, 0  ;;  %s2990_s1 = smov 8  }
  0x8e   : > { %s2991_s25 = smov 128   ;;  %s2363_s16 = smov [#allocation14]  }
  0x8f   : > { %1979 = dma.hbm_to_vmem [thread:$0]  (!%p2989_p1), %s2938_s5, 512, %s274_s6, [#allocation10], %s2991_s25, %s2991_s25, %s2990_s1  }
  0x90   : > { %s299_s4 = sshll.u32 %s2363_s16, 4  ;;  %s2189_s14 = scalar_lea.hbm %s2940_s7, 512  ;;  %s300_s4 = int_to_ptr.vmem [resolvable:$true] %s299_s4 }
  0x91   : > { %p2190_p11 = scmp.ne.s32.totalorder %s2940_s7, %s2189_s14  ;;  %p2196_p5 = scmp.lt.u32.totalorder %s2189_s14, %s2940_s7 }
  0x93   : > { %p2192_p6 = pnand %p2190_p11, %p2988_p3 }
  0x95   : > { %p2193_p8 = pneg %p2192_p6 }
  0x97   : > { %p2198_p10 = pnand %p2196_p5, %p2193_p8 }
  0x99   : > { %2201 = shalt.err (!%p2198_p10)
}
  0x9a   : > { %s2202_s6 = scalar_lea.vmem %s300_s4, 512  ;;  %p2210_p0 = scmp.lt.s32.totalorder %s300_s4, %s300_s4 }
  0x9b   : > { %p2203_p2 = scmp.ne.s32.totalorder %s300_s4, %s2202_s6  ;;  %p2211_p7 = scmp.lt.s32.totalorder %s2202_s6, %s2202_s6 }
  0x9d   : > { %p2205_p4 = pnand %p2203_p2, %p2988_p3  ;;  %p2212_p9 = por %p2211_p7, %p2210_p0 }
  0x9f   : > { %p2206_p12 = pneg %p2205_p4 }
  0xa1   : > { %p2213_p13 = pnand %p2212_p9, %p2206_p12 }
  0xa3   : > { %2216 = shalt.err (!%p2213_p13)
}
  0xa4   : > { %1985 = dma.hbm_to_vmem [thread:$0]  (!%p2989_p1), %s2940_s7, 512, %s300_s4, [#allocation13], %s2991_s25, %s2991_s25, %s2990_s1  }
  0xa5   : > { %s2654_s26 = scalar_lea.hbm %s2933_s0, %s2559_s24  ;;  %s317_s15 = scalar_lea.vmem [#allocation3], %s2556_s10 }
  0xa6   : > { %s324_s30 = sshll.u32 %s317_s15, 4  ;;  %s2992_s16 = sand.u32 1, %s2351_s29   ;;  %s325_s30 = int_to_ptr.vmem [resolvable:$true] %s324_s30 }
  0xa7   : > { %s314_s18 = scalar_lea.sflag [#allocation4], %s2992_s16  ;;  %s2217_s13 = scalar_lea.hbm %s2654_s26, 128 }
  0xa8   : > { %p2218_p13 = scmp.ne.s32.totalorder %s2654_s26, %s2217_s13  ;;  %p2993_p3 = scmp.ne.s32.totalorder %s2987_s17, 0 }
  0xa9   : > { %s2222_s4 = scalar_lea.hbm %s2933_s0, 256  ;;  %p2223_p1 = scmp.lt.u32.totalorder %s2654_s26, %s2933_s0 }
  0xaa   : > { %p2220_p11 = pnand %p2218_p13, %p2993_p3  ;;  %p2224_p8 = scmp.lt.u32.totalorder %s2222_s4, %s2217_s13 }
  0xab   : > { %p2226_p10 = scmp.lt.u32.totalorder %s2217_s13, %s2654_s26 }
  0xac   : > { %p2221_p6 = pneg %p2220_p11  ;;  %p2225_p5 = por %p2224_p8, %p2223_p1 }
  0xae   : > { %p2227_p2 = por %p2226_p10, %p2225_p5 }
  0xb0   : > { %p2228_p4 = pnand %p2227_p2, %p2221_p6 }
  0xb2   : > { %2231 = shalt.err (!%p2228_p4)
}
  0xb3   : > { %s2232_s6 = scalar_lea.vmem %s325_s30, 128  ;;  %s2364_s8 = smov [#allocation3]  }
  0xb4   : > { %p2233_p12 = scmp.ne.s32.totalorder %s325_s30, %s2232_s6  ;;  %s2237_s27 = sshll.u32 %s2364_s8, 4  ;;  %s2238_s27 = int_to_ptr.vmem [resolvable:$false] %s2237_s27 }
  0xb5   : > { %s2239_s21 = scalar_lea.vmem %s2238_s27, 256  ;;  %p2240_p9 = scmp.lt.s32.totalorder %s325_s30, %s2238_s27 }
  0xb6   : > { %p2235_p0 = pnand %p2233_p12, %p2993_p3  ;;  %p2241_p13 = scmp.lt.s32.totalorder %s2239_s21, %s2232_s6 }
  0xb8   : > { %p2236_p7 = pneg %p2235_p0  ;;  %p2242_p11 = por %p2241_p13, %p2240_p9 }
  0xba   : > { %p2243_p1 = pnand %p2242_p11, %p2236_p7 }
  0xbc   : > { %2246 = shalt.err (!%p2243_p1)
}
  0xbd   : > { %p2994_p8 = scmp.ne.s32.totalorder %s2985_s9, 0  ;;  %s2680_s16 = scalar_lea.hbm %s2935_s2, %s2559_s24 }
  0xbe   : > { %s353_s13 = scalar_lea.vmem [#allocation8], %s2556_s10  ;;  %s2247_s25 = scalar_lea.hbm %s2680_s16, 128 }
  0xbf   : > { %1989 = dma.hbm_to_vmem [thread:$0]  (!%p2994_p8), %s2654_s26, 128, %s325_s30, %s314_s18  }
  0xc0   : > { %s360_s1 = sshll.u32 %s353_s13, 4  ;;  %p2248_p6 = scmp.ne.s32.totalorder %s2680_s16, %s2247_s25  ;;  %s361_s1 = int_to_ptr.vmem [resolvable:$true] %s360_s1 }
  0xc1   : > { %s2252_s26 = scalar_lea.hbm %s2935_s2, 256  ;;  %p2253_p2 = scmp.lt.u32.totalorder %s2680_s16, %s2935_s2 }
  0xc2   : > { %p2250_p5 = pnand %p2248_p6, %p2993_p3  ;;  %p2254_p4 = scmp.lt.u32.totalorder %s2252_s26, %s2247_s25 }
  0xc3   : > { %p2256_p0 = scmp.lt.u32.totalorder %s2247_s25, %s2680_s16 }
  0xc4   : > { %p2251_p10 = pneg %p2250_p5  ;;  %p2255_p12 = por %p2254_p4, %p2253_p2 }
  0xc6   : > { %p2257_p7 = por %p2256_p0, %p2255_p12 }
  0xc8   : > { %p2258_p9 = pnand %p2257_p7, %p2251_p10 }
  0xca   : > { %2261 = shalt.err (!%p2258_p9)
}
  0xcb   : > { %s2262_s10 = scalar_lea.vmem %s361_s1, 128  ;;  %s2365_s24 = smov [#allocation8]  }
  0xcc   : > { %p2263_p13 = scmp.ne.s32.totalorder %s361_s1, %s2262_s10  ;;  %s2267_s23 = sshll.u32 %s2365_s24, 4  ;;  %s2268_s23 = int_to_ptr.vmem [resolvable:$false] %s2267_s23 }
  0xcd   : > { %s2269_s6 = scalar_lea.vmem %s2268_s23, 256  ;;  %p2270_p6 = scmp.lt.s32.totalorder %s361_s1, %s2268_s23 }
  0xce   : > { %p2265_p11 = pnand %p2263_p13, %p2993_p3  ;;  %p2271_p5 = scmp.lt.s32.totalorder %s2269_s6, %s2262_s10 }
  0xd0   : > { %p2266_p1 = pneg %p2265_p11  ;;  %p2272_p8 = por %p2271_p5, %p2270_p6 }
  0xd2   : > { %p2273_p2 = pnand %p2272_p8, %p2266_p1 }
  0xd4   : > { %2276 = shalt.err (!%p2273_p2)
}
  0xd5   : > { %p2995_p4 = scmp.ne.s32.totalorder %s2985_s9, 0  ;;  %p2996_p10 = scmp.ne.s32.totalorder %s2973_s12, 0 }
  0xd6   : > { %s2704_s17 = sand.u32 (!%p2996_p10), 1, %s2347_s28   ;;  %p2997_p3 = scmp.ne.s32.totalorder (!%p2996_p10), %s2980_s20, 0 }
  0xd7   : > { %1995 = dma.hbm_to_vmem [thread:$0]  (!%p2995_p4), %s2680_s16, 128, %s361_s1, %s2577_s19  }
  0xd8   : > { %375 = sbr.rel (%p2996_p10) target bundleno = 3163 (0xc5b), region = 52  ;;  %s2707_s8 = sshll.u32 (!%p2996_p10), %s2704_s17, 3 }
  0xd9   : > { %s378_s27 = scalar_lea.sflag (!%p2996_p10), [#allocation4], %s2704_s17  ;;  %s381_s21 = scalar_lea.vmem (!%p2996_p10), [#allocation3], %s2707_s8 }
  0xdf   : > { %2322 = dma.done.wait (%p2997_p3), %s378_s27, 128  }
  0xe0   : > { %2324 = vsyncadd (%p2997_p3), %s378_s27, 4294967168  ;;  %s386_s12 = sand.u32 1, %s2442_s11   ;;  %s390_s9 = scalar_lea.vmem [#allocation6], %s2707_s8 }
  0xe1   : > { %s387_s19 = scalar_lea.sflag [#allocation7], %s386_s12 }
  0xe2   : > { %2326 = dma.done.wait (%p2997_p3), %s387_s19, 256  }
  0xe3   : > { %2328 = vsyncadd (%p2997_p3), %s387_s19, 4294967040  ;;  %s399_s22 = scalar_lea.vmem [#allocation8], %s2707_s8  ;;  %p2998_p8 = scmp.eq.s32.totalorder %s2442_s11, 0 }
  0xe5   : > { %2330 = dma.done.wait (%p2998_p8), [#allocation10], 1024   ;;  %p2999_p12 = pmov %p2998_p8 }
  0xe6   : > { %p3000_p0 = pmov %p2998_p8 }
  0xe7   : > { %2332 = vsyncadd (%p2999_p12), [#allocation10], 4294966272 }
  0xe8   : > { %2334 = dma.done.wait (%p3000_p0), [#allocation13], 1024   ;;  %p3001_p7 = pmov %p3000_p0 }
  0xe9   : > { %v2366_v0 = vmov 0.0|0.0   ;;  %vm2367_vm0 = vmmov 0   ;;  %v2368_v1 = vmov 0.0   ;;  %vm472_vm1 = vcmask 261120   ;;  %v558_v3 = vld [vmem:[#allocation11] sm:$0xff]  ;;  %v559_v4 = vld [vmem:[#allocation11 + $0x8] sm:$0xff] }
  0xea   : > { %2336 = vsyncadd (%p3001_p7), [#allocation13], 4294966272  ;;  %1923 = vmatprep.subr.bf16.mxu1 %v2366_v0  ;;  %1915 = vmatprep.subr.bf16.mxu0 %v2366_v0  ;;  %v468_v5 = vld [vmem:[#allocation9] sm:$0xff]  ;;  %v1924_v6 = vpack.c.bf16 %v559_v4, %v558_v3  ;;  %v469_v7 = vld [vmem:[#allocation9 + $0x8] sm:$0xff]  ;;  %vm779_vm3 = vcmask 64512   ;;  %s2369_s20 = smov 120   ;;  %v736_v39 = vlaneseq }
  0xeb   : > { %1850 = vmatprep.mubr.msk.f32.mxu1 %vm2367_vm0, %v2368_v1  ;;  %1839 = vmatprep.mubr.msk.f32.mxu0 %vm2367_vm0, %v2368_v1  ;;  %vm2738_vm2 = vmpackc.low %vm472_vm1, %vm472_vm1  ;;  %v1916_v8 = vpack.c.bf16 %v469_v7, %v468_v5  ;;  %v560_v9 = vld [vmem:[#allocation11 + $0x10] sm:$0xff]  ;;  %v561_v10 = vld [vmem:[#allocation11 + $0x18] sm:$0xff]  ;;  %p461_p9 = scmp.lt.s32.totalorder %s2442_s11, 1  ;;  %s2370_s25 = smov 112   ;;  %vm752_vm5 = vcmask 57344   ;;  %vm1119_vm6 = vcmask 130112  }
  0xec   : > { %1926 = vmatpush3.bf16.xpose.msk.msra.mxu1 %vm2738_vm2, %v1924_v6  ;;  %v470_v11 = vld [vmem:[#allocation9 + $0x10] sm:$0xff]  ;;  %v471_v12 = vld [vmem:[#allocation9 + $0x18] sm:$0xff]  ;;  %v1928_v13 = vpack.c.bf16 %v561_v10, %v560_v9  ;;  %v465_v15 = vld [vmem:[%s390_s9] sm:$0xff]  ;;  %v2797_v40 = vshrl.u32 %v736_v39, 7  ;;  %v739_v41 = vand.u32 127, %v736_v39  ;;  %s2371_s4 = smov 104  }
  0xed   : > { %1918 = vmatpush3.bf16.xpose.msk.msra.mxu0 %vm2738_vm2, %v1916_v8  ;;  %1927 = vmatprep.subr.bf16.mxu1 %v2366_v0  ;;  %v1920_v14 = vpack.c.bf16 %v471_v12, %v470_v11  ;;  %v464_v16 = vld [vmem:[%s381_s21] sm:$0xff]  ;;  %v647_v21 = vld [vmem:[#allocation12] sm:$0xff]  ;;  %v648_v22 = vld [vmem:[#allocation12 + $0x8] sm:$0xff]  ;;  %s462_s15 = scalar_select %p461_p9, %s2442_s11, 1  ;;  %vm1294_vm7 = vcmask 195712   ;;  %vm1469_vm8 = vcmask 261312  }
  0xee   : > { %1919 = vmatprep.subr.bf16.mxu0 %v2366_v0  ;;  %v1932_v23 = vpack.c.bf16 %v648_v22, %v647_v21  ;;  %v649_v24 = vld [vmem:[#allocation12 + $0x10] sm:$0xff]  ;;  %v650_v25 = vld [vmem:[#allocation12 + $0x18] sm:$0xff]  ;;  %vm740_vm4 = vcmp.eq.s32.totalorder %v2797_v40, %v739_v41  ;;  %v748_v45 = vsub.s32 0, %v2797_v40  ;;  %s2372_s14 = smov 16   ;;  %s2373_s26 = smov 8  }
  0xef   : > { %v1936_v26 = vpack.c.bf16 %v650_v25, %v649_v24  ;;  %v466_v27 = vld [vmem:[%s399_s22] sm:$0xff]  ;;  %v1773_v42 = vsel %vm740_vm4, 1.0, %v2368_v1  ;;  %s463_s1 = scalar_lea.vmem %s2936_s3, %s462_s15  ;;  %s2374_s10 = smov 24  }
  0xf0   : > { %v743_v44 = vmul.f32 0.999999, %v1773_v42  ;;  %v2806_v46 = vld [vmem:[%s463_s1] sm:$0x1]  ;;  %s3004_s24 = sld [smem:[#allocation25_spill]]  ;;  %s1792_s23 = sshll.u32 %s2442_s11, 7 }
  0xf1   : > { %v749_v48 = vrot.slane %v2806_v46, %v748_v45  ;;  %s460_s6 = scalar_lea.vmem [#allocation15], %s2707_s8  ;;  %s3005_s19 = sld [smem:[#allocation30_spill]] }
  0xf2   : > { %v744_v47 = vsub.f32 1.0, %v743_v44  ;;  %s1576_s27 = sshll.u32 %s460_s6, 4  ;;  %s1563_s22 = scalar_lea.sflag [#allocation5], %s2704_s17  ;;  %s2890_s27 = int_to_ptr.vmem [resolvable:$true] %s1576_s27 }
  0xf3   : > { %s2375_s11 = smov [#allocation15]  }
  0xf4   : > { %1930 = vmatpush3.bf16.xpose.msk.msra.mxu1 %vm2738_vm2, %v1928_v13  ;;  %v2811_v49 = vmul.f32 %v749_v48, %v744_v47  ;;  %s2281_s8 = sshll.u32 %s2375_s11, 4  ;;  %s2282_s8 = int_to_ptr.vmem [resolvable:$false] %s2281_s8 }
  0xf5   : > { %1922 = vmatpush3.bf16.xpose.msk.msra.mxu0 %vm2738_vm2, %v1920_v14  ;;  %1864 = vmatprep.subr.mxu1 %v2368_v1  ;;  %s2283_s15 = scalar_lea.vmem %s2282_s8, 256  ;;  %p2284_p5 = scmp.lt.s32.totalorder %s2890_s27, %s2282_s8 }
  0xf6   : > { %1931 = vmatprep.subr.bf16.mxu0 %v2366_v0  ;;  %p3006_p11 = scmp.ne.s32.totalorder %s3004_s24, 0 }
  0xf7   : > { %s2888_s9 = scalar_lea.hbm %s3005_s19, %s1792_s23 }
  0xfb   : > { %1851 = vmatmul.mubr.msk.f32.vlgmr.msra.gmra.mrb[0].mxu1 %vm472_vm1, %v465_v15 }
  0xfc   : > { %1840 = vmatmul.mubr.msk.f32.vlgmr.msra.gmra.mrb[0].mxu0 %vm472_vm1, %v464_v16  ;;  %1866 = vmatprep.mubr.msk.f32.mxu1 %vm2367_vm0, %v2368_v1 }
  0xfd   : > { %1861 = vmatprep.mubr.msk.f32.mxu0 %vm2367_vm0, %v2368_v1  ;;  %1934 = vmatpush3.bf16.xpose.msk.msra.mxu0 %vm2738_vm2, %v1932_v23 }
  0xfe   : > { %1935 = vmatprep.subr.bf16.mxu0 %v2366_v0 }
 0x105   : > { %1938 = vmatpush3.bf16.xpose.msk.msra.mxu0 %vm2738_vm2, %v1936_v26 }
 0x106   : > { %1939 = vmatprep.subr.bf16.mxu0 %v2366_v0 }
 0x10c   : > { %1862 = vmatmul.mubr.msk.f32.vlgmr.msra.gmra.mrb[2].mxu0 %vm472_vm1, %v466_v27 }
 0x10d   : > { %1912 = vmatprep.mubr.msk.f32.mxu0 %vm2367_vm0, %v2368_v1 }
 0x1ce   : > { %v2764_v17 = vpop.f32.mrb[0].mxu1 }
 0x1cf   : > { %947 = vrot.lane.b32.xlu1 %v2764_v17, %s2369_s20  ;;  %v1852_v18 = vpop.f32.mrb[1].mxu1  ;;  %1865 = vmatpush3.xpose.msk.msra.mxu1 %vm779_vm3, %v2764_v17  ;;  %v2770_v19 = vpop.f32.mrb[0].mxu0 }
 0x1d0   : > { %v1841_v20 = vpop.f32.mrb[1].mxu0  ;;  %1869 = vmatprep.subr.mxu1 %v2368_v1 }
 0x1d2   : > { %1867 = vmatmul.mubr.msk.f32.vlgmr.msra.gmra.mrb[2].mxu1 %vm779_vm3, %v2770_v19 }
 0x1d3   : > { %945 = vrot.lane.b32.xlu1 %v2770_v19, %s2369_s20  ;;  %1871 = vmatprep.mubr.msk.f32.mxu1 %vm2367_vm0, %v2368_v1 }
 0x1df   : > { %v2792_v37 = vpop.f32.mrb[2].mxu0 }
 0x1e0   : > { %v1863_v38 = vpop.f32.mrb[3].mxu0  ;;  %1870 = vmatpush3.msra.mxu1 %v2792_v37 }
 0x1e1   : > { %1874 = vmatprep.subr.mxu1 %v2368_v1  ;;  %v753_v38 = vsel %vm752_vm5, %v2806_v46, 0.0 }
 0x241   : > { %v948_v52 = vpop.permute.xlu1 %947 }
 0x245   : > { %v946_v54 = vpop.permute.xlu1 %945 }
 0x2a5   : > { %v852_v28 = vpop.f32.mrb[2].mxu1 }
 0x2a6   : > { %v856_v29 = vmul.f32 0.35355338, %v852_v28  ;;  %v1868_v30 = vpop.f32.mrb[3].mxu1 }
 0x2a8   : > { %v857_v31 = vsel %vm779_vm3, %v856_v29, -inf }
 0x2a9   : > { %858 = vmax.xlane.f32.xlu0 %v857_v31 }
 0x336   : > { %v859_v32 = vpop.xlane.xlu0 %858 }
 0x337   : > { %v860_v33 = vsub.f32 %v856_v29, %v859_v32 }
 0x339   : > { %v861_v34 = vmul.f32 1.442695, %v860_v33 }
 0x33b   : > { %2057 = vpow2.f32 %v861_v34 }
 0x345   : > { %v2058_v35 = vpop.eup %2057 }
 0x346   : > { %v863_v36 = vsel %vm779_vm3, %v2058_v35, 0.0 }
 0x347   : > { %864 = vadd.xlane.f32.xlu0 %v863_v36 }
 0x3d4   : > { %v865_v43 = vpop.xlane.xlu0 %864 }
 0x3d5   : > { %2059 = vrcp.f32 %v865_v43 }
 0x3df   : > { %v2060_v50 = vpop.eup %2059 }
 0x3e0   : > { %v867_v51 = vmul.f32 %v2060_v50, %v2058_v35 }
 0x3e2   : > { %v868_v53 = vmul.f32 %v867_v51, %v2811_v49 }
 0x3e4   : > { %1872 = vmatmul.mubr.msk.f32.vlgmr.msra.gmra.mrb[4].mxu1 %vm779_vm3, %v868_v53 }
 0x3e5   : > { %1875 = vmatpush3.xpose.msk.msra.mxu1 %vm779_vm3, %v948_v52  ;;  %1876 = vmatprep.mubr.msk.f32.mxu1 %vm2367_vm0, %v2368_v1 }
 0x3e6   : > { %1879 = vmatprep.subr.mxu1 %v2368_v1 }
 0x3e8   : > { %1877 = vmatmul.mubr.msk.f32.vlgmr.msra.gmra.mrb[6].mxu1 %vm779_vm3, %v946_v54 }
 0x3e9   : > { %1881 = vmatprep.mubr.msk.f32.mxu1 %vm2367_vm0, %v2368_v1 }
 0x4b7   : > { %v2822_v55 = vpop.f32.mrb[4].mxu1 }
 0x4b8   : > { %v942_v56 = vsub.f32 %v2792_v37, %v2822_v55  ;;  %v1873_v57 = vpop.f32.mrb[5].mxu1  ;;  %v1475_v55 = vld [vmem:[#allocation14 + $0x18] sm:$0xff] }
 0x4bb   : > { %v1019_v58 = vpop.f32.mrb[6].mxu1 }
 0x4bc   : > { %v1023_v59 = vmul.f32 0.35355338, %v1019_v58  ;;  %v1878_v60 = vpop.f32.mrb[7].mxu1 }
 0x4bd   : > { %v769_v60 = vsub.f32 1.0, %v2806_v46 }
 0x4be   : > { %v1024_v61 = vsel %vm779_vm3, %v1023_v59, -inf }
 0x4bf   : > { %1025 = vmax.xlane.f32.xlu0 %v1024_v61 }
 0x4d5   : > { %1037 = vrot.lane.b32.xlu0 %v2792_v37, %s2369_s20  ;;  %s2277_s20 = scalar_lea.vmem %s2890_s27, 128 }
 0x4d6   : > { %p2278_p13 = scmp.ne.s32.totalorder %s2890_s27, %s2277_s20  ;;  %p2285_p2 = scmp.lt.s32.totalorder %s2283_s15, %s2277_s20 }
 0x4d8   : > { %p2279_p1 = pnand %p2278_p13, %p3006_p11  ;;  %p2286_p4 = por %p2285_p2, %p2284_p5 }
 0x4d9   : > { %1123 = vrot.lane.b32.xlu0 %v2764_v17, %s2370_s25 }
 0x4da   : > { %p2280_p6 = pneg %p2279_p1 }
 0x4dc   : > { %p2287_p10 = pnand %p2286_p4, %p2280_p6 }
 0x4dd   : > { %1121 = vrot.lane.b32.xlu0 %v2770_v19, %s2370_s25 }
 0x54c   : > { %v1026_v62 = vpop.xlane.xlu0 %1025 }
 0x54d   : > { %v1027_v63 = vsub.f32 %v1023_v59, %v1026_v62 }
 0x54f   : > { %v1028_v3 = vmul.f32 1.442695, %v1027_v63 }
 0x550   : > { %v1038_v4 = vpop.permute.xlu0 %1037 }
 0x551   : > { %2061 = vpow2.f32 %v1028_v3  ;;  %1880 = vmatpush3.msra.mxu1 %v1038_v4 }
 0x552   : > { %1884 = vmatprep.subr.mxu1 %v2368_v1 }
 0x554   : > { %v1124_v10 = vpop.permute.xlu0 %1123 }
 0x558   : > { %v1122_v12 = vpop.permute.xlu0 %1121 }
 0x55b   : > { %v2062_v5 = vpop.eup %2061 }
 0x55c   : > { %v1030_v6 = vsel %vm779_vm3, %v2062_v5, 0.0 }
 0x55d   : > { %1031 = vadd.xlane.f32.xlu1 %v1030_v6 }
 0x56e   : > { %1212 = vrot.lane.b32.xlu1 %v2792_v37, %s2370_s25 }
 0x572   : > { %1298 = vrot.lane.b32.xlu1 %v2764_v17, %s2371_s4 }
 0x5ea   : > { %v1032_v7 = vpop.xlane.xlu1 %1031 }
 0x5eb   : > { %2063 = vrcp.f32 %v1032_v7 }
 0x5ee   : > { %v1213_v13 = vpop.permute.xlu1 %1212 }
 0x5f2   : > { %v1299_v26 = vpop.permute.xlu1 %1298 }
 0x5f5   : > { %v2064_v8 = vpop.eup %2063 }
 0x5f6   : > { %v1034_v9 = vmul.f32 %v2064_v8, %v2062_v5 }
 0x5f8   : > { %v1035_v11 = vmul.f32 %v1034_v9, %v2811_v49 }
 0x5fa   : > { %1882 = vmatmul.mubr.msk.f32.vlgmr.msra.gmra.mrb[8].mxu1 %vm779_vm3, %v1035_v11 }
 0x5fb   : > { %1885 = vmatpush3.xpose.msk.msra.mxu1 %vm779_vm3, %v1124_v10  ;;  %1886 = vmatprep.mubr.msk.f32.mxu1 %vm2367_vm0, %v2368_v1 }
 0x5fc   : > { %1889 = vmatprep.subr.mxu1 %v2368_v1 }
 0x5fe   : > { %1887 = vmatmul.mubr.msk.f32.vlgmr.msra.gmra.mrb[10].mxu1 %vm779_vm3, %v1122_v12 }
 0x5ff   : > { %1890 = vmatpush3.msra.mxu1 %v1213_v13  ;;  %1891 = vmatprep.mubr.msk.f32.mxu1 %vm2367_vm0, %v2368_v1 }
 0x600   : > { %1894 = vmatprep.subr.mxu1 %v2368_v1 }
 0x6cd   : > { %v1109_v14 = vpop.f32.mrb[8].mxu1 }
 0x6ce   : > { %v1883_v15 = vpop.f32.mrb[9].mxu1 }
 0x6d1   : > { %v1195_v16 = vpop.f32.mrb[10].mxu1 }
 0x6d2   : > { %v1199_v17 = vmul.f32 0.35355338, %v1195_v16  ;;  %v1888_v18 = vpop.f32.mrb[11].mxu1  ;;  %v1474_v16 = vld [vmem:[#allocation14 + $0x10] sm:$0xff] }
 0x6d4   : > { %v1200_v20 = vsel %vm779_vm3, %v1199_v17, -inf }
 0x6d5   : > { %1201 = vmax.xlane.f32.xlu0 %v1200_v20 }
 0x762   : > { %v1202_v21 = vpop.xlane.xlu0 %1201 }
 0x763   : > { %v1203_v22 = vsub.f32 %v1199_v17, %v1202_v21 }
 0x765   : > { %v1204_v23 = vmul.f32 1.442695, %v1203_v22 }
 0x767   : > { %2065 = vpow2.f32 %v1204_v23 }
 0x771   : > { %v2066_v24 = vpop.eup %2065 }
 0x772   : > { %v1206_v25 = vsel %vm779_vm3, %v2066_v24, 0.0 }
 0x773   : > { %1207 = vadd.xlane.f32.xlu1 %v1206_v25 }
 0x784   : > { %1296 = vrot.lane.b32.xlu1 %v2770_v19, %s2371_s4 }
 0x800   : > { %v1208_v27 = vpop.xlane.xlu1 %1207 }
 0x801   : > { %2067 = vrcp.f32 %v1208_v27 }
 0x804   : > { %v1297_v31 = vpop.permute.xlu1 %1296 }
 0x80b   : > { %v2068_v28 = vpop.eup %2067 }
 0x80c   : > { %v1210_v29 = vmul.f32 %v2068_v28, %v2066_v24 }
 0x80e   : > { %v1211_v30 = vmul.f32 %v1210_v29, %v2811_v49 }
 0x810   : > { %1892 = vmatmul.mubr.msk.f32.vlgmr.msra.gmra.mrb[12].mxu1 %vm779_vm3, %v1211_v30 }
 0x811   : > { %1895 = vmatpush3.xpose.msk.msra.mxu1 %vm779_vm3, %v1299_v26  ;;  %1896 = vmatprep.mubr.msk.f32.mxu1 %vm2367_vm0, %v2368_v1 }
 0x812   : > { %1899 = vmatprep.subr.mxu1 %v2368_v1 }
 0x814   : > { %1897 = vmatmul.mubr.msk.f32.vlgmr.msra.gmra.mrb[14].mxu1 %vm779_vm3, %v1297_v31 }
 0x815   : > { %1901 = vmatprep.mubr.msk.f32.mxu1 %vm2367_vm0, %v2368_v1 }
 0x8e3   : > { %v1284_v19 = vpop.f32.mrb[12].mxu1 }
 0x8e4   : > { %v1893_v32 = vpop.f32.mrb[13].mxu1 }
 0x8e7   : > { %v1370_v33 = vpop.f32.mrb[14].mxu1 }
 0x8e8   : > { %v1374_v34 = vmul.f32 0.35355338, %v1370_v33  ;;  %v1898_v35 = vpop.f32.mrb[15].mxu1 }
 0x8ea   : > { %v1375_v36 = vsel %vm779_vm3, %v1374_v34, -inf }
 0x8eb   : > { %1376 = vmax.xlane.f32.xlu0 %v1375_v36 }
 0x901   : > { %1387 = vrot.lane.b32.xlu0 %v2792_v37, %s2371_s4 }
 0x920   : > { %754 = vadd.xlane.f32.xlu0 %v753_v38 }
 0x936   : > { %1289 = vrot.lane.b32.xlu0 %v1284_v19, %s2372_s14 }
 0x978   : > { %v1377_v39 = vpop.xlane.xlu0 %1376 }
 0x979   : > { %v1378_v41 = vsub.f32 %v1374_v34, %v1377_v39 }
 0x97b   : > { %v1379_v1 = vmul.f32 1.442695, %v1378_v41 }
 0x97c   : > { %v1388_v42 = vpop.permute.xlu0 %1387 }
 0x97d   : > { %2069 = vpow2.f32 %v1379_v1  ;;  %1900 = vmatpush3.msra.mxu1 %v1388_v42 }
 0x987   : > { %v2070_v43 = vpop.eup %2069 }
 0x988   : > { %v1381_v44 = vsel %vm779_vm3, %v2070_v43, 0.0 }
 0x989   : > { %1382 = vadd.xlane.f32.xlu1 %v1381_v44 }
 0x99a   : > { %1114 = vrot.lane.b32.xlu1 %v1109_v14, %s2373_s26  ;;  %v1473_v14 = vld [vmem:[#allocation14 + $0x8] sm:$0xff] }
 0x9ad   : > { %v755_v47 = vpop.xlane.xlu0 %754 }
 0x9ae   : > { %v756_v48 = vrot.slane %v755_v47, 4 }
 0x9b0   : > { %v757_v50 = vadd.f32 %v756_v48, %v755_v47 }
 0x9b1   : > { %v1290_v10 = vpop.permute.xlu0 %1289 }
 0x9b2   : > { %v758_v51 = vrot.slane %v757_v50, 2  ;;  %v1292_v12 = vsub.f32 %v2792_v37, %v1290_v10 }
 0x9b4   : > { %v759_v52 = vadd.f32 %v758_v51, %v757_v50 }
 0x9b6   : > { %v760_v53 = vrot.slane %v759_v52, 1 }
 0x9b8   : > { %v761_v54 = vadd.f32 %v760_v53, %v759_v52 }
 0x9ba   : > { %1947 = vpush %v761_v54 }
 0x9eb   : > { %s1948_s30 = spop %1947 }
 0x9ec   : > { %s765_s18 = sadd.f32 1e-09, %s1948_s30  ;;  %v763_v58 = vstv %s1948_s30 }
 0x9ed   : > { %v764_v59 = vsub.f32 %v763_v58, %v2806_v46 }
 0x9ee   : > { %v766_v57 = vstv %s765_s18 }
 0x9ef   : > { %2071 = vrcp.f32 %v766_v57 }
 0x9f9   : > { %v2072_v61 = vpop.eup %2071 }
 0x9fa   : > { %v768_v62 = vmul.f32 %v2072_v61, %v764_v59 }
 0x9fc   : > { %v770_v63 = vmul.f32 %v769_v60, %v768_v62 }
 0x9fe   : > { %v771_v3 = vmul.f32 100.0, %v770_v63 }
 0xa00   : > { %v775_v4 = vrot.slane %v771_v3, %v748_v45 }
 0xa02   : > { %777 = vbcast.lane.b32.xlu1 %v775_v4, 256 }
 0xa16   : > { %v1383_v5 = vpop.xlane.xlu1 %1382 }
 0xa17   : > { %2073 = vrcp.f32 %v1383_v5 }
 0xa1a   : > { %v1115_v9 = vpop.permute.xlu1 %1114 }
 0xa1b   : > { %v1117_v46 = vsub.f32 %v2792_v37, %v1115_v9 }
 0xa21   : > { %v2074_v6 = vpop.eup %2073 }
 0xa22   : > { %v1385_v7 = vmul.f32 %v2074_v6, %v2070_v43 }
 0xa24   : > { %v1386_v8 = vmul.f32 %v1385_v7, %v2811_v49  ;;  %v1472_v49 = vld [vmem:[#allocation14] sm:$0xff] }
 0xa25   : > { %v1940_v15 = vpack.c.bf16 %v1473_v14, %v1472_v49 }
 0xa26   : > { %1902 = vmatmul.mubr.msk.f32.vlgmr.msra.gmra.mrb[16].mxu1 %vm779_vm3, %v1386_v8 }
 0xa27   : > { %1942 = vmatpush3.bf16.xpose.msk.msra.mxu0 %vm2738_vm2, %v1940_v15 }
 0xa28   : > { %1943 = vmatprep.subr.bf16.mxu0 %v2366_v0 }
 0xa74   : > { %v778_v11 = vpop.permute.xlu1 %777 }
 0xa75   : > { %v943_v40 = vmul.f32 %v942_v56, %v778_v11  ;;  %v1118_v45 = vmul.f32 %v1117_v46, %v778_v11  ;;  %v1293_v13 = vmul.f32 %v1292_v12, %v778_v11  ;;  %v1944_v56 = vpack.c.bf16 %v1475_v55, %v1474_v16 }
 0xa77   : > { %944 = vst.msk [vmem:[#allocation2] sm:$0xff] %vm779_vm3, %v943_v40  ;;  %1946 = vmatpush3.bf16.xpose.msk.msra.mxu0 %vm2738_vm2, %v1944_v56 }
 0xa78   : > { %1120 = vst.msk [vmem:[#allocation2] sm:$0xff] %vm1119_vm6, %v1118_v45 }
 0xa79   : > { %1295 = vst.msk [vmem:[#allocation2] sm:$0xff] %vm1294_vm7, %v1293_v13 }
 0xaf9   : > { %v1459_v17 = vpop.f32.mrb[16].mxu1 }
 0xafa   : > { %1464 = vrot.lane.b32.xlu1 %v1459_v17, %s2374_s10  ;;  %v1903_v18 = vpop.f32.mrb[17].mxu1 }
 0xb6c   : > { %v1465_v20 = vpop.permute.xlu1 %1464 }
 0xb6d   : > { %v1467_v21 = vsub.f32 %v2792_v37, %v1465_v20 }
 0xb6f   : > { %v1468_v22 = vmul.f32 %v1467_v21, %v778_v11 }
 0xb71   : > { %1470 = vst.msk [vmem:[#allocation2] sm:$0xff] %vm1469_vm8, %v1468_v22 }
 0xb78   : > { %v1471_v0 = vld [vmem:[#allocation2] sm:$0xff] }
 0xb79   : > { %1913 = vmatmul.mubr.msk.f32.vlgmr.msra.gmra.mrb[4].mxu0 %vm472_vm1, %v1471_v0 }
 0xc4c   : > { %v1557_v2 = vpop.f32.mrb[4].mxu0 }
 0xc4d   : > { %1561 = vst.msk [vmem:[%s460_s6] sm:$0xff] %vm472_vm1, %v1557_v2  ;;  %v1914_v37 = vpop.f32.mrb[5].mxu0 }
 0xc4e   : > { %2290 = shalt.err (!%p2287_p10)
}
 0xc4f   : > { %s2291_s17 = scalar_lea.hbm %s2888_s9, 128  ;;  %s2295_s1 = scalar_lea.hbm %s3005_s19, 256 }
 0xc50   : > { %p2292_p3 = scmp.ne.s32.totalorder %s2888_s9, %s2291_s17  ;;  %p2296_p0 = scmp.lt.u32.totalorder %s2888_s9, %s3005_s19 }
 0xc51   : > { %p2297_p7 = scmp.lt.u32.totalorder %s2295_s1, %s2291_s17  ;;  %p2299_p13 = scmp.lt.u32.totalorder %s2291_s17, %s2888_s9 }
 0xc52   : > { %p2293_p8 = pnand %p2292_p3, %p3006_p11 }
 0xc53   : > { %p2298_p9 = por %p2297_p7, %p2296_p0 }
 0xc54   : > { %p2294_p12 = pneg %p2293_p8 }
 0xc55   : > { %p2300_p1 = por %p2299_p13, %p2298_p9 }
 0xc57   : > { %p2301_p6 = pnand %p2300_p1, %p2294_p12 }
 0xc59   : > { %2304 = shalt.err (!%p2301_p6)
}
 0xc5a   : > { %1971 = dma.vmem_to_hbm [thread:$0]  (%p3006_p11), %s2890_s27, 128, %s2888_s9, %s1563_s22  }
 0xc5b PF: > { %s3007_s14 = sld [smem:[#allocation21_spill]]  ;;  %s3008_s26 = sld [smem:[#allocation26_spill]] }
 0xc5c   : > { %s3009_s30 = sld [smem:[#allocation22_spill]] }
 0xc61   : > { %s1588_s18 = sand.u32 1, %s3007_s14   ;;  %p3010_p5 = scmp.ne.s32.totalorder %s3008_s26, 0 }
 0xc62   : > { %p3011_p2 = scmp.ge.s32.totalorder %s3009_s30, 2  ;;  %s1589_s10 = scalar_lea.sflag [#allocation5], %s1588_s18 }
 0xc64   : > { %p1997_p4 = pnand %p3011_p2, %p3010_p5 }
 0xc66   : > { %2338 = dma.done.wait (!%p1997_p4), %s1589_s10, 128  }
 0xc67   : > { %2340 = vsyncadd (!%p1997_p4), %s1589_s10, 4294967168  ;;  %s3012_s30 = sld [smem:[#allocation23_spill]]  ;;  %s3013_s23 = sld [smem:[#allocation24_spill]] }
 0xc68   : > { %s3014_s27 = smov %s2347_s28  ;;  %s3015_s28 = smov %s2351_s29 }
 0xc6d   : > { %p26_p10 = scmp.ge.s32.totalorder %s3012_s30, 4   ;;  %s3016_s29 = smov %s3013_s23 }
 0xc6f   :  { %28 = sbr.rel (!%p26_p10) target bundleno = 14 (0xe), region = 140 }
 0xc76   :  { %1594 = vsyncpa [#allocation4], 1 }
 0xc77   :  { %1596 = vsyncpa [#allocation4 + $0x1], 1 }
 0xc78   :  { %1597 = vsyncpa [#allocation7], 1 }
 0xc79   :  { %1599 = vsyncpa [#allocation7 + $0x1], 1 }
 0xc7a   :  { %1600 = vsyncpa [#allocation10], 1 }
 0xc7b   :  { %1601 = vsyncpa [#allocation13], 1 }
 0xc7c   :  { %1602 = vsyncpa [#allocation5], 1 }
 0xc7d   :  { %1604 = vsyncpa [#allocation5 + $0x1], 1 }

</bundles_post_ra>
